<compile_context>
chip_gen: v5e
topology: v5e:2x2
jax: 0.10.0
libtpu: 0.0.40
codegen_flags: <defaults>
</compile_context>

<pallas_src>
import functools
import math

import jax
import jax.numpy as jnp
from jax.experimental import pallas as pl
from jax.experimental.pallas import tpu as pltpu


_VMEM_LIMIT_BYTES = 32 * 1024 * 1024            # safe scoped-VMEM limit on v5e/v6e/v7x
_VMEM_BUDGET_BYTES = int(0.6 * _VMEM_LIMIT_BYTES)  # working-set target (leave headroom)


def _cc_fused_kernel(w_ref, s_ref, t_ref, o_ref, *, batch):
    """Accumulate weighted adjacent-row correlation for one lane tile."""
    k = pl.program_id(1)  # reduction step over lane tiles

    @pl.when(k == 0)
    def _():
        o_ref[...] = jnp.zeros_like(o_ref)

    delta = jnp.abs(
        s_ref[...].astype(jnp.float32) - t_ref[...].astype(jnp.float32)
    )  # (B, tile_d)
    # "Next row" via an XLU sublane rotate (co-issues with the VPU multiplies and
    # avoids sublane-misaligned slices). Row batch-1 wraps around to row 0 and is
    # masked out below.
    nxt = pltpu.roll(delta, shift=batch - 1, axis=0)
    row = jax.lax.broadcasted_iota(jnp.int32, delta.shape, 0)
    prod = jnp.where(row < batch - 1, delta * nxt, 0.0)
    # Per-lane weight = 1/((B-1)*prod(trailing dims)) of the owning pair, 0 on padding
    # lanes. Accumulate into the resident full-tile output block; the cross-lane /
    # cross-sublane reduce happens once, outside the kernel.
    o_ref[...] += prod * w_ref[...]


def _pick_tiling(batch, d_total, in_itemsize, max_tile_d=None):
    """Largest 128-multiple lane tile that fits the VMEM budget (+ grid shape)."""
    # Per lane: 2 inputs x 2 pipeline buffers x B rows (native dtype)
    #           + double-buffered weight row + f32 accumulator (counted x2).
    per_lane = 2 * 2 * batch * in_itemsize + 2 * 4 + 2 * batch * 4
    tile_d = max(128, (_VMEM_BUDGET_BYTES // per_lane) // 128 * 128)
    # TODO(synk): tile the batch axis with a 1-row halo if B is so large that even a
    # 128-lane tile exceeds the VMEM budget.
    if max_tile_d is not None:
        tile_d = max(128, min(tile_d, (max_tile_d // 128) * 128))
    d_total_128 = -(-d_total // 128) * 128
    tile_d = min(tile_d, d_total_128)
    n_tiles = -(-d_total // tile_d)
    n_par = 2 if n_tiles >= 2 else 1          # independent axis for v7x's 2 TensorCores
    if n_tiles % n_par:
        n_tiles += 1
    return tile_d, n_par, n_tiles // n_par, n_tiles * tile_d


def cc_loss(s_features, t_features, *, max_tile_d=None):
    """CCLoss.forward: one fused Pallas call over all feature pairs."""
    assert len(s_features) == len(t_features) and len(s_features) > 0
    batch = int(s_features[0].shape[0])
    assert batch >= 2, "need at least 2 batch rows for adjacent-row correlation"

    s_parts, t_parts, w_parts = [], [], []
    for f_s, f_t in zip(s_features, t_features):
        assert f_s.shape == f_t.shape and f_s.ndim >= 2
        assert f_s.shape[0] == batch, "all pairs must share the batch size"
        d = math.prod(f_s.shape[1:])
        # torch: (delta[:-1]*delta[1:]).sum(1).mean() -> sum over dim 1, mean over
        # (B-1) * prod(shape[2:]) remaining elements.
        div = (batch - 1) * math.prod(f_s.shape[2:])
        s_parts.append(f_s.reshape(batch, d))
        t_parts.append(f_t.reshape(batch, d))
        w_parts.append(jnp.full((1, d), 1.0 / div, dtype=jnp.float32))

    d_total = sum(int(p.shape[1]) for p in s_parts)
    s_dtype = jnp.result_type(*s_parts)
    t_dtype = jnp.result_type(*t_parts)
    itemsize = max(jnp.dtype(s_dtype).itemsize, jnp.dtype(t_dtype).itemsize)

    tile_d, n_par, n_k, d_pad = _pick_tiling(batch, d_total, itemsize, max_tile_d)

    pad = d_pad - d_total
    if pad:
        s_parts.append(jnp.zeros((batch, pad), s_dtype))
        t_parts.append(jnp.zeros((batch, pad), t_dtype))
        w_parts.append(jnp.zeros((1, pad), jnp.float32))

    # One materialization per side, kept in the inputs' native dtype (no f32 up-cast).
    s_cat = s_parts[0] if len(s_parts) == 1 else jnp.concatenate(s_parts, axis=1)
    t_cat = t_parts[0] if len(t_parts) == 1 else jnp.concatenate(t_parts, axis=1)
    w_cat = w_parts[0] if len(w_parts) == 1 else jnp.concatenate(w_parts, axis=1)

    kernel = functools.partial(_cc_fused_kernel, batch=batch)
    lane_idx = lambda p, k: (0, p * n_k + k)

    partials = pl.pallas_call(
        kernel,
        out_shape=jax.ShapeDtypeStruct((n_par, batch, tile_d), jnp.float32),
        grid_spec=pltpu.PrefetchScalarGridSpec(
            num_scalar_prefetch=0,
            grid=(n_par, n_k),
            in_specs=[
                pl.BlockSpec((1, tile_d), lane_idx),       # per-lane pair weights
                pl.BlockSpec((batch, tile_d), lane_idx),   # student features
                pl.BlockSpec((batch, tile_d), lane_idx),   # teacher features
            ],
            out_specs=pl.BlockSpec((None, batch, tile_d), lambda p, k: (p, 0, 0)),
        ),
        compiler_params=pltpu.CompilerParams(
            dimension_semantics=("parallel", "arbitrary"),
            vmem_limit_bytes=_VMEM_LIMIT_BYTES,
        ),
    )(w_cat, s_cat, t_cat)

    # Final reduce on a tiny lane-dense array, done in plain JAX.
    return jnp.sum(partials)


def _reference(s_features, t_features):
    """Pure-JAX reference mirroring the PyTorch forward exactly."""
    loss = jnp.float32(0.0)
    for f_s, f_t in zip(s_features, t_features):
        delta = jnp.abs(f_s.astype(jnp.float32) - f_t.astype(jnp.float32))
        loss = loss + jnp.mean(jnp.sum(delta[:-1] * delta[1:], axis=1))
    return loss


if __name__ == "__main__":
    key = jax.random.PRNGKey(0)
    ks = jax.random.split(key, 6)

    B = 8
    s_features = [
        jax.random.normal(ks[0], (B, 256), dtype=jnp.float32),        # embedding hook
        jax.random.normal(ks[1], (B, 4, 16, 16), dtype=jnp.float32),  # conv-feature hook
        jax.random.normal(ks[2], (B, 128), dtype=jnp.float32),
    ]
    t_features = [
        jax.random.normal(ks[3], (B, 256), dtype=jnp.float32),
        jax.random.normal(ks[4], (B, 4, 16, 16), dtype=jnp.float32),
        jax.random.normal(ks[5], (B, 128), dtype=jnp.float32),
    ]

    ref = jax.block_until_ready(_reference(s_features, t_features))

    # Natural tiling: all pairs fit one lane tile -> single fused call, one grid step.
    out = jax.block_until_ready(cc_loss(s_features, t_features))
    assert jnp.allclose(out, ref, rtol=1e-4, atol=1e-4), (out, ref)

    # Forced small tile: exercises lane padding, the multi-step reduction accumulator
    # and the parallel (2-TensorCore) grid axis.
    out_tiled = jax.block_until_ready(cc_loss(s_features, t_features, max_tile_d=128))
    assert jnp.allclose(out_tiled, ref, rtol=1e-4, atol=1e-4), (out_tiled, ref)

    print("KERNEL_OK")
</pallas_src>

<mosaic_0001>
module attributes {stable_mosaic.version = 11 : i64} {
  func.func @_cc_fused_kernel(%arg0: i32, %arg1: i32, %arg2: memref<1x1408xf32, #tpu.memory_space<vmem>>, %arg3: memref<8x1408xf32, #tpu.memory_space<vmem>>, %arg4: memref<8x1408xf32, #tpu.memory_space<vmem>>, %arg5: memref<1x8x1408xf32, #tpu.memory_space<vmem>>) attributes {dimension_semantics = [#tpu.dimension_semantics<parallel>, #tpu.dimension_semantics<arbitrary>], iteration_bounds = array<i64: 1, 1>, scalar_prefetch = 0 : i64, scratch_operands = 0 : i64, tpu.core_type = #tpu.core_type<tc>, window_params = [{transform_indices = @transform_0, window_bounds = array<i64: 1, 1408>}, {transform_indices = @transform_1, window_bounds = array<i64: 8, 1408>}, {transform_indices = @transform_2, window_bounds = array<i64: 8, 1408>}, {transform_indices = @transform_3, window_bounds = array<i64: 1, 8, 1408>}]} {
    %c0_i32 = arith.constant 0 : i32
    %0 = arith.cmpi eq, %arg1, %c0_i32 : i32
    %1 = arith.extui %0 : i1 to i32
    %c0_i32_0 = arith.constant 0 : i32
    %2 = arith.cmpi ne, %1, %c0_i32_0 : i32
    scf.if %2 {
      %cst_13 = arith.constant 0.000000e+00 : f32
      %23 = vector.broadcast %cst_13 : f32 to vector<8x1408xf32>
      %c0_14 = arith.constant 0 : index
      %c0_15 = arith.constant 0 : index
      %c0_16 = arith.constant 0 : index
      %24 = vector.load %arg5[%c0_14, %c0_15, %c0_16] : memref<1x8x1408xf32, #tpu.memory_space<vmem>>, vector<1x8x1408xf32>
      %25 = vector.shape_cast %24 : vector<1x8x1408xf32> to vector<8x1408xf32>
      %26 = vector.shape_cast %23 : vector<8x1408xf32> to vector<1x8x1408xf32>
      tpu.vector_store %arg5[%c0_14, %c0_15, %c0_16], %26 {strides = array<i32>} : memref<1x8x1408xf32, #tpu.memory_space<vmem>>, vector<1x8x1408xf32>,
    } else {
    }
    %c0 = arith.constant 0 : index
    %c0_1 = arith.constant 0 : index
    %3 = vector.load %arg3[%c0, %c0_1] : memref<8x1408xf32, #tpu.memory_space<vmem>>, vector<8x1408xf32>
    %c0_2 = arith.constant 0 : index
    %c0_3 = arith.constant 0 : index
    %4 = vector.load %arg4[%c0_2, %c0_3] : memref<8x1408xf32, #tpu.memory_space<vmem>>, vector<8x1408xf32>
    %5 = arith.subf %3, %4 : vector<8x1408xf32>
    %6 = math.absf %5 : vector<8x1408xf32>
    %c7_i32 = arith.constant 7 : i32
    %7 = tpu.dynamic_rotate %6 by %c7_i32 dim 0 : vector<8x1408xf32>, i32 -> vector<8x1408xf32>
    %8 = tpu.iota {dimensions = array<i32: 0>} : vector<8x1408xi32>
    %c7_i32_4 = arith.constant 7 : i32
    %9 = vector.broadcast %c7_i32_4 : i32 to vector<8x1408xi32>
    %10 = arith.cmpi slt, %8, %9 : vector<8x1408xi32>
    %11 = arith.mulf %6, %7 : vector<8x1408xf32>
    %cst = arith.constant 0.000000e+00 : f32
    %12 = vector.broadcast %cst : f32 to vector<8x1408xf32>
    %13 = arith.select %10, %11, %12 : vector<8x1408xi1>, vector<8x1408xf32>
    %c0_5 = arith.constant 0 : index
    %c0_6 = arith.constant 0 : index
    %c0_7 = arith.constant 0 : index
    %14 = vector.load %arg5[%c0_5, %c0_6, %c0_7] : memref<1x8x1408xf32, #tpu.memory_space<vmem>>, vector<1x8x1408xf32>
    %15 = vector.shape_cast %14 : vector<1x8x1408xf32> to vector<8x1408xf32>
    %c0_8 = arith.constant 0 : index
    %c0_9 = arith.constant 0 : index
    %16 = vector.load %arg2[%c0_8, %c0_9] : memref<1x1408xf32, #tpu.memory_space<vmem>>, vector<1x1408xf32>
    %17 = vector.broadcast %16 : vector<1x1408xf32> to vector<8x1408xf32>
    %18 = arith.mulf %13, %17 : vector<8x1408xf32>
    %19 = arith.addf %15, %18 : vector<8x1408xf32>
    %c0_10 = arith.constant 0 : index
    %c0_11 = arith.constant 0 : index
    %c0_12 = arith.constant 0 : index
    %20 = vector.load %arg5[%c0_10, %c0_11, %c0_12] : memref<1x8x1408xf32, #tpu.memory_space<vmem>>, vector<1x8x1408xf32>
    %21 = vector.shape_cast %20 : vector<1x8x1408xf32> to vector<8x1408xf32>
    %22 = vector.shape_cast %19 : vector<8x1408xf32> to vector<1x8x1408xf32>
    tpu.vector_store %arg5[%c0_10, %c0_11, %c0_12], %22 {strides = array<i32>} : memref<1x8x1408xf32, #tpu.memory_space<vmem>>, vector<1x8x1408xf32>,
    return
  }
  func.func @transform_0(%arg0: i32, %arg1: i32) -> (i32, i32) {
    %c1_i32 = arith.constant 1 : i32
    %0 = arith.muli %arg0, %c1_i32 : i32
    %1 = arith.addi %0, %arg1 : i32
    %c0_i32 = arith.constant 0 : i32
    %c0_i32_0 = arith.constant 0 : i32
    return %c0_i32, %1 : i32, i32
  }
  func.func @transform_1(%arg0: i32, %arg1: i32) -> (i32, i32) {
    %c1_i32 = arith.constant 1 : i32
    %0 = arith.muli %arg0, %c1_i32 : i32
    %1 = arith.addi %0, %arg1 : i32
    %c0_i32 = arith.constant 0 : i32
    %c0_i32_0 = arith.constant 0 : i32
    return %c0_i32, %1 : i32, i32
  }
  func.func @transform_2(%arg0: i32, %arg1: i32) -> (i32, i32) {
    %c1_i32 = arith.constant 1 : i32
    %0 = arith.muli %arg0, %c1_i32 : i32
    %1 = arith.addi %0, %arg1 : i32
    %c0_i32 = arith.constant 0 : i32
    %c0_i32_0 = arith.constant 0 : i32
    return %c0_i32, %1 : i32, i32
  }
  func.func @transform_3(%arg0: i32, %arg1: i32) -> (i32, i32, i32) {
    %c0_i32 = arith.constant 0 : i32
    %c0_i32_0 = arith.constant 0 : i32
    %c0_i32_1 = arith.constant 0 : i32
    return %arg0, %c0_i32, %c0_i32_0 : i32, i32, i32
  }
}

</mosaic_0001>

<bundles_post_ra>
// kernel: tpu_custom_call.1
= control target key start
LH: loop header
LB: loop body
LE: loop exit
PB: predicated region body
PF: predicated region fallthrough
CT: control target
= control target key end

     0   :  { %8 = vsyncpa [#allocation3], 0  ;;  %s434_s0 = inlined_call_operand.hbm [shape: f32[1,1408], index: 0, kind: input, shape index: {}]   ;;  %s435_s1 = inlined_call_operand.hbm [shape: f32[8,1408], index: 1, kind: input, shape index: {}]   ;;  %s436_s2 = inlined_call_operand.hbm [shape: f32[8,1408], index: 2, kind: input, shape index: {}]   ;;  %s437_s3 = inlined_call_operand.hbm [shape: f32[1,8,1408], index: 3, kind: output, shape index: {}]  }
   0x1   :  { %9 = vsyncpa [#allocation6], 0  ;;  %s34_s14 = sshll.u32 %s435_s1, 4  ;;  %s35_s14 = int_to_ptr.hbm [resolvable:$true] %s34_s14 }
   0x2   :  { %10 = vsyncpa [#allocation4], 0  ;;  %s363_s15 = smov [#allocation5]   ;;  %s19_s19 = sshll.u32 %s434_s0, 4  ;;  %s20_s19 = int_to_ptr.hbm [resolvable:$true] %s19_s19 }
   0x3   :  { %s36_s16 = sshll.u32 %s363_s15, 4  ;;  %s364_s20 = smov [#allocation2]   ;;  %s37_s16 = int_to_ptr.vmem [resolvable:$true] %s36_s16 }
   0x4   :  { %39 = dma.hbm_to_vmem [thread:$0]  %s35_s14, 1408, %s37_s16, [#allocation6]  }
   0x5   :  { %s21_s21 = sshll.u32 %s364_s20, 4  ;;  %s49_s24 = sshll.u32 %s436_s2, 4  ;;  %s22_s21 = int_to_ptr.vmem [resolvable:$true] %s21_s21  ;;  %s50_s24 = int_to_ptr.hbm [resolvable:$true] %s49_s24 }
   0x6   :  { %24 = dma.hbm_to_vmem [thread:$0]  %s20_s19, 176, %s22_s21, [#allocation3]  }
   0x7   :  { %s365_s1 = smov [#allocation7]  }
   0x8   :  { %s51_s25 = sshll.u32 %s365_s1, 4  ;;  %s52_s25 = int_to_ptr.vmem [resolvable:$true] %s51_s25 }
   0x9   :  { %54 = dma.hbm_to_vmem [thread:$0]  %s50_s24, 1408, %s52_s25, [#allocation6]  }
   0xa   :  { %357 = dma.done.wait [#allocation3], 176  }
   0xb   :  { %358 = vsyncadd [#allocation3], 4294967120 }
   0xc   :  { %359 = dma.done.wait [#allocation6], 2816  }
   0xd   :  { %360 = vsyncadd [#allocation6], 4294964480  ;;  %v143_v0 = vlaneseq  ;;  %v88_v2 = vld [vmem:[#allocation5] sm:$0xff]  ;;  %v99_v3 = vld [vmem:[#allocation7] sm:$0xff]  ;;  %s366_s0 = smov [#allocation8]   ;;  %s245_s28 = sshll.u32 %s437_s3, 4  ;;  %s246_s28 = int_to_ptr.hbm [resolvable:$true] %s245_s28 }
   0xe   :  { %v398_v4 = vld [vmem:[#allocation2] sm:$0xff]  ;;  %v110_v5 = vsub.f32 %v88_v2, %v99_v3  ;;  %v89_v7 = vld [vmem:[#allocation5 + $0x8] sm:$0xff]  ;;  %v100_v8 = vld [vmem:[#allocation7 + $0x8] sm:$0xff]  ;;  %s243_s2 = sshll.u32 %s366_s0, 4  ;;  %s244_s2 = int_to_ptr.vmem [resolvable:$true] %s243_s2 }
   0xf   :  { %v396_v1 = vshrl.u32 %v143_v0, 7  ;;  %v183_v6 = vperm.slane %v398_v4, 0  ;;  %v90_v9 = vld [vmem:[#allocation5 + $0x10] sm:$0xff]  ;;  %v111_v10 = vsub.f32 %v89_v7, %v100_v8  ;;  %v184_v11 = vperm.slane %v398_v4, 1  ;;  %v101_v12 = vld [vmem:[#allocation7 + $0x10] sm:$0xff]  ;;  %v91_v14 = vld [vmem:[#allocation5 + $0x18] sm:$0xff] }
  0x10   :  { %v185_v13 = vperm.slane %v398_v4, 2  ;;  %v102_v15 = vld [vmem:[#allocation7 + $0x18] sm:$0xff]  ;;  %v186_v16 = vperm.slane %v398_v4, 3  ;;  %v121_v17 = vand.u32 2147483647, %v110_v5  ;;  %v112_v18 = vsub.f32 %v90_v9, %v101_v12  ;;  %v92_v20 = vld [vmem:[#allocation5 + $0x20] sm:$0xff] }
  0x11   :  { %vm145_vm0 = vcmp.lt.s32.totalorder %v396_v1, 7  ;;  %v113_v19 = vsub.f32 %v91_v14, %v102_v15  ;;  %v103_v21 = vld [vmem:[#allocation7 + $0x20] sm:$0xff]  ;;  %v187_v22 = vperm.slane %v398_v4, 4  ;;  %v93_v23 = vld [vmem:[#allocation5 + $0x28] sm:$0xff]  ;;  %v122_v24 = vand.u32 2147483647, %v111_v10 }
  0x12   :  { %v114_v25 = vsub.f32 %v92_v20, %v103_v21  ;;  %v104_v26 = vld [vmem:[#allocation7 + $0x28] sm:$0xff]  ;;  %v188_v27 = vperm.slane %v398_v4, 5  ;;  %v94_v28 = vld [vmem:[#allocation5 + $0x30] sm:$0xff]  ;;  %v105_v29 = vld [vmem:[#allocation7 + $0x30] sm:$0xff]  ;;  %v132_v30 = vrot.slane %v121_v17, 1  ;;  %v189_v38 = vperm.slane %v398_v4, 6 }
  0x13   :  { %v123_v31 = vand.u32 2147483647, %v112_v18  ;;  %v124_v32 = vand.u32 2147483647, %v113_v19  ;;  %v115_v33 = vsub.f32 %v93_v23, %v104_v26  ;;  %v95_v34 = vld [vmem:[#allocation5 + $0x38] sm:$0xff]  ;;  %v133_v35 = vrot.slane %v122_v24, 1 }
  0x14   :  { %v125_v36 = vand.u32 2147483647, %v114_v25  ;;  %v116_v37 = vsub.f32 %v94_v28, %v105_v29  ;;  %v106_v39 = vld [vmem:[#allocation7 + $0x38] sm:$0xff]  ;;  %v146_v40 = vmul.f32 %v132_v30, %v121_v17  ;;  %v96_v63 = vld [vmem:[#allocation5 + $0x40] sm:$0xff]  ;;  %v107_v0 = vld [vmem:[#allocation7 + $0x40] sm:$0xff]  ;;  %v190_v17 = vperm.slane %v398_v4, 7 }
  0x15   :  { %v134_v41 = vrot.slane %v123_v31, 1  ;;  %v135_v42 = vrot.slane %v124_v32, 1  ;;  %v126_v43 = vand.u32 2147483647, %v115_v33  ;;  %v147_v44 = vmul.f32 %v133_v35, %v122_v24  ;;  %v108_v7 = vld [vmem:[#allocation7 + $0x48] sm:$0xff]  ;;  %v98_v10 = vld [vmem:[#allocation5 + $0x50] sm:$0xff] }
  0x16   :  { %v136_v45 = vrot.slane %v125_v36, 1  ;;  %v127_v46 = vand.u32 2147483647, %v116_v37  ;;  %v117_v47 = vsub.f32 %v95_v34, %v106_v39  ;;  %v157_v48 = vsel %vm145_vm0, %v146_v40, 0.0  ;;  %v180_v19 = vld [vmem:[#allocation2 + $0x8] sm:$0x7] }
  0x17   :  { %v148_v49 = vmul.f32 %v134_v41, %v123_v31  ;;  %v149_v50 = vmul.f32 %v135_v42, %v124_v32  ;;  %v137_v51 = vrot.slane %v126_v43, 1  ;;  %v205_v52 = vmul.f32 %v183_v6, %v157_v48  ;;  %v97_v6 = vld [vmem:[#allocation5 + $0x48] sm:$0xff] }
  0x18   :  { %v158_v53 = vsel %vm145_vm0, %v147_v44, 0.0  ;;  %v150_v54 = vmul.f32 %v136_v45, %v125_v36  ;;  %v138_v55 = vrot.slane %v127_v46, 1  ;;  %v128_v9 = vand.u32 2147483647, %v117_v47 }
  0x19   :  { %v206_v56 = vmul.f32 %v184_v11, %v158_v53  ;;  %v159_v57 = vsel %vm145_vm0, %v148_v49, 0.0  ;;  %v160_v58 = vsel %vm145_vm0, %v149_v50, 0.0  ;;  %v151_v59 = vmul.f32 %v137_v51, %v126_v43  ;;  %227 = vst [vmem:[#allocation8] sm:$0xff] %v205_v52  ;;  %v109_v11 = vld [vmem:[#allocation7 + $0x50] sm:$0xff] }
  0x1a   :  { %v207_v60 = vmul.f32 %v185_v13, %v159_v57  ;;  %v208_v61 = vmul.f32 %v186_v16, %v160_v58  ;;  %v161_v62 = vsel %vm145_vm0, %v150_v54, 0.0  ;;  %v152_v5 = vmul.f32 %v138_v55, %v127_v46 }
  0x1b   :  { %v209_v2 = vmul.f32 %v187_v22, %v161_v62  ;;  %v162_v3 = vsel %vm145_vm0, %v151_v59, 0.0  ;;  %228 = vst [vmem:[#allocation8 + $0x8] sm:$0xff] %v206_v56  ;;  %v118_v13 = vsub.f32 %v96_v63, %v107_v0  ;;  %v139_v15 = vrot.slane %v128_v9, 1 }
  0x1c   :  { %v210_v8 = vmul.f32 %v188_v27, %v162_v3  ;;  %v163_v12 = vsel %vm145_vm0, %v152_v5, 0.0  ;;  %229 = vst [vmem:[#allocation8 + $0x10] sm:$0xff] %v207_v60  ;;  %v119_v16 = vsub.f32 %v97_v6, %v108_v7  ;;  %v120_v20 = vsub.f32 %v98_v10, %v109_v11 }
  0x1d   :  { %v211_v14 = vmul.f32 %v189_v38, %v163_v12  ;;  %230 = vst [vmem:[#allocation8 + $0x18] sm:$0xff] %v208_v61  ;;  %v129_v18 = vand.u32 2147483647, %v118_v13  ;;  %v153_v21 = vmul.f32 %v139_v15, %v128_v9  ;;  %v191_v26 = vperm.slane %v180_v19, 0 }
  0x1e   :  { %231 = vst [vmem:[#allocation8 + $0x20] sm:$0xff] %v209_v2  ;;  %v130_v22 = vand.u32 2147483647, %v119_v16  ;;  %v131_v24 = vand.u32 2147483647, %v120_v20  ;;  %v192_v30 = vperm.slane %v180_v19, 1 }
  0x1f   :  { %232 = vst [vmem:[#allocation8 + $0x28] sm:$0xff] %v210_v8  ;;  %v140_v23 = vrot.slane %v129_v18, 1  ;;  %v164_v25 = vsel %vm145_vm0, %v153_v21, 0.0  ;;  %v193_v32 = vperm.slane %v180_v19, 2 }
  0x20   :  { %233 = vst [vmem:[#allocation8 + $0x30] sm:$0xff] %v211_v14  ;;  %v141_v27 = vrot.slane %v130_v22, 1  ;;  %v212_v28 = vmul.f32 %v190_v17, %v164_v25  ;;  %v142_v31 = vrot.slane %v131_v24, 1 }
  0x21   :  { %v154_v29 = vmul.f32 %v140_v23, %v129_v18 }
  0x22   :  { %v155_v4 = vmul.f32 %v141_v27, %v130_v22  ;;  %v156_v34 = vmul.f32 %v142_v31, %v131_v24  ;;  %234 = vst [vmem:[#allocation8 + $0x38] sm:$0xff] %v212_v28 }
  0x23   :  { %v165_v33 = vsel %vm145_vm0, %v154_v29, 0.0 }
  0x24   :  { %v213_v35 = vmul.f32 %v191_v26, %v165_v33  ;;  %v166_v36 = vsel %vm145_vm0, %v155_v4, 0.0  ;;  %v167_v38 = vsel %vm145_vm0, %v156_v34, 0.0 }
  0x25   :  { %v214_v37 = vmul.f32 %v192_v30, %v166_v36  ;;  %v215_v39 = vmul.f32 %v193_v32, %v167_v38 }
  0x26   :  { %235 = vst [vmem:[#allocation8 + $0x40] sm:$0xff] %v213_v35 }
  0x27   :  { %236 = vst [vmem:[#allocation8 + $0x48] sm:$0xff] %v214_v37 }
  0x28   :  { %237 = vst [vmem:[#allocation8 + $0x50] sm:$0xff] %v215_v39 }
  0x29   :  { %248 = dma.vmem_to_hbm [thread:$0]  %s244_s2, 1408, %s246_s28, [#allocation4]  }
  0x2a   :  { %361 = dma.done.wait [#allocation4], 1408  }
  0x2b   :  { %362 = vsyncadd [#allocation4], 4294965888 }
  0x2c   :  { %253 = vsyncpa [#allocation3], 1 }
  0x2d   :  { %254 = vsyncpa [#allocation6], 1 }
  0x2e   :  { %255 = vsyncpa [#allocation4], 1 }

</bundles_post_ra>
